<compile_context>
chip_gen: v5e
topology: v5e:2x2
jax: 0.10.0
libtpu: 0.0.40
codegen_flags: <defaults>
</compile_context>

<pallas_src>
import jax
import jax.numpy as jnp
from jax.experimental import pallas as pl
from jax.experimental.pallas import tpu as pltpu

_LANE = 128        # vreg lane width: hidden dims padded to this
_SUBLANE = 16      # bf16 sublane packing: batch tiles are multiples of this


def _round_up(x, m):
    return (x + m - 1) // m * m


def _activation(h, kind):
    if kind == "relu":
        return jnp.maximum(h, 0.0)
    if kind == "tanh":
        return jnp.tanh(h)
    if kind == "silu":
        return h * jax.nn.sigmoid(h)
    raise ValueError(f"Activation {kind} is not supported.")


def _make_mlp_kernel(num_hidden, out_dim, activation):
    """Builds the full-MLP-per-batch-tile kernel (everything resident in VMEM)."""

    def kernel(x_ref, *refs):
        o_ref = refs[-1]
        p = refs[:-1]  # w0, b0, w1, b1, ..., w_last, b_last

        # Input streamed as un-padded f32; cast to bf16 in-kernel for the MXU.
        h = x_ref[...].astype(jnp.bfloat16)

        for l in range(num_hidden):
            w = p[2 * l][...]          # bf16 (K, H_pad)
            b = p[2 * l + 1][...]      # f32  (1, H_pad)
            h = jnp.dot(h, w, preferred_element_type=jnp.float32) + b
            h = _activation(h, activation)
            if l < num_hidden - 1:
                h = h.astype(jnp.bfloat16)   # bf16 only where it feeds the MXU again

        w_out = p[-2][...]
        b_out = p[-1][...]
        if out_dim == 1:
            # Output width is 1: VPU multiply + XLU lane reduction against an f32 weight
            # row instead of a 127/128-wasted MXU pass; sigmoid on the single real lane.
            y = jnp.sum(h * w_out, axis=-1, keepdims=True) + b_out
        else:
            y = jnp.dot(h.astype(jnp.bfloat16), w_out,
                        preferred_element_type=jnp.float32) + b_out
        o_ref[...] = jax.nn.sigmoid(y).astype(o_ref.dtype)

    return kernel


def prepare_params(params):
    """One-time prep of the (in_features, out_features)-oriented weights.

    Hidden weights: bf16, output dim zero-padded to a 128-lane multiple (zero padding is
    semantics-preserving: relu/tanh/silu(0) == 0, padded bias entries are 0). The first
    layer's K dim stays the real input width (no padded-x pass in the wrapper). The final
    layer with out width 1 is stored as an f32 row (1, H_pad) for the reduce-based head.
    """
    n = len(params)
    prepped = []
    in_dim = params[0][0].shape[0]        # first K stays un-padded
    for l, (w, b) in enumerate(params):
        fi, fo = w.shape
        b = jnp.asarray(b, jnp.float32).reshape(1, fo)
        is_last = l == n - 1
        if is_last and fo == 1:
            wp = jnp.zeros((1, in_dim), jnp.float32).at[0, :fi].set(
                w[:, 0].astype(jnp.float32))
            bp = b                                           # (1, 1) f32
        elif is_last:
            wp = jnp.zeros((in_dim, fo), jnp.bfloat16).at[:fi, :].set(
                w.astype(jnp.bfloat16))
            bp = b
        else:
            fop = _round_up(fo, _LANE)
            wp = jnp.zeros((in_dim, fop), jnp.bfloat16).at[:fi, :fo].set(
                w.astype(jnp.bfloat16))
            bp = jnp.zeros((1, fop), jnp.float32).at[:, :fo].set(b)
            in_dim = fop
        prepped.append((wp, bp))
    out_dim = params[-1][0].shape[1]
    return prepped, out_dim


def net_forward(x, prepped, out_dim, *, activation="relu", batch_tile=None):
    """Run the Pallas MLP kernel.

    Args:
      x: (B, input_size) float32; B may be ragged (rows are zero-padded to a tile multiple
         and the padded rows are sliced off before returning).
      prepped: output of prepare_params().
      out_dim: logical output size.
      batch_tile: rows per grid step (rounded up to a multiple of 16).
    """
    B, F = x.shape
    num_hidden = len(prepped) - 1

    # Default tile: big enough to amortize the ~0.35 us/step grid overhead, but at most
    # half the batch so the grid has >= 2 steps and both v7x TensorCores get work.
    if batch_tile is None:
        batch_tile = min(2048, max((B + 1) // 2, 8))
    tb = _round_up(batch_tile, _SUBLANE)
    Bp = _round_up(B, tb)

    xp = x.astype(jnp.float32)
    if Bp != B:
        xp = jnp.pad(xp, ((0, Bp - B), (0, 0)))
    grid = (Bp // tb,)

    in_specs = [pl.BlockSpec((tb, F), lambda i: (i, 0))]
    args = [xp]
    for w, b in prepped:
        in_specs.append(pl.BlockSpec(w.shape, lambda i: (0, 0)))  # resident / replicated
        in_specs.append(pl.BlockSpec(b.shape, lambda i: (0, 0)))
        args.extend([w, b])
    out_spec = pl.BlockSpec((tb, out_dim), lambda i: (i, 0))

    # VMEM budget: resident params (x2 buffering margin) + double-buffered x/out tiles
    # + f32 activation headroom.  Actual use is a few MiB at most -> no 32 MiB floor.
    param_bytes = sum(int(a.size) * a.dtype.itemsize for wb in prepped for a in wb)
    max_width = max([F] + [w.shape[1] for w, _ in prepped])
    tile_bytes = tb * F * 4 + tb * out_dim * 4
    act_bytes = 3 * tb * max_width * 4
    needed = 2 * param_bytes + 2 * tile_bytes + act_bytes
    vmem_limit = int(min(max(4 * needed, 4 << 20), 32 << 20))

    flops = 0
    for l, (w, _) in enumerate(prepped):
        if l == num_hidden and out_dim == 1:
            flops += 2 * Bp * w.shape[1]                      # multiply + reduce
        else:
            flops += 2 * Bp * w.shape[0] * w.shape[1]
    transcendentals = Bp * out_dim
    if activation in ("tanh", "silu"):
        transcendentals += Bp * sum(w.shape[1] for w, _ in prepped[:num_hidden])
    bytes_accessed = Bp * F * 4 + Bp * out_dim * 4 + param_bytes

    out = pl.pallas_call(
        _make_mlp_kernel(num_hidden, out_dim, activation),
        out_shape=jax.ShapeDtypeStruct((Bp, out_dim), jnp.float32),
        grid_spec=pltpu.PrefetchScalarGridSpec(
            num_scalar_prefetch=0,
            grid=grid,
            in_specs=in_specs,
            out_specs=out_spec,
        ),
        compiler_params=pltpu.CompilerParams(
            dimension_semantics=("parallel",),
            vmem_limit_bytes=vmem_limit,
        ),
        cost_estimate=pl.CostEstimate(
            flops=flops,
            transcendentals=transcendentals,
            bytes_accessed=bytes_accessed,
        ),
    )(*args)

    return out[:B]


def init_params(key, input_size, hidden_sizes, output_size=1):
    """Deterministic Kaiming-uniform-style init (matches PyTorch Linear default scheme).

    Weights are stored transposed vs PyTorch, i.e. (in_features, out_features)."""
    sizes = [input_size] + list(hidden_sizes) + [output_size]
    params = []
    for fan_in, fan_out in zip(sizes[:-1], sizes[1:]):
        key, kw, kb = jax.random.split(key, 3)
        bound = 1.0 / jnp.sqrt(fan_in)
        w = jax.random.uniform(kw, (fan_in, fan_out), jnp.float32, -bound, bound)
        b = jax.random.uniform(kb, (1, fan_out), jnp.float32, -bound, bound)
        params.append((w, b))
    return params


def net_reference(x, params, activation="relu"):
    """Pure-JAX f32 reference of the same forward pass."""
    h = x
    for w, b in params[:-1]:
        h = _activation(h @ w + b, activation)
    w, b = params[-1]
    return jax.nn.sigmoid(h @ w + b)


# TODO(synk): nn.Dropout is training-mode only; it is identity at inference and omitted here.

if __name__ == "__main__":
    # Small shapes consistent with Net(input_size=16, hidden_sizes=[32, 32], output_size=1)
    B, INPUT_SIZE, HIDDEN_SIZES, OUTPUT_SIZE = 32, 16, [32, 32], 1

    key = jax.random.PRNGKey(0)
    key, kx = jax.random.split(key)
    x = jax.random.normal(kx, (B, INPUT_SIZE), dtype=jnp.float32)

    params = init_params(key, INPUT_SIZE, HIDDEN_SIZES, OUTPUT_SIZE)
    prepped, out_dim = prepare_params(params)

    # batch_tile=16 -> grid=(2,): exercises the input/output pipeline and megacore sharding.
    out = net_forward(x, prepped, out_dim, activation="relu", batch_tile=16)
    out = jax.block_until_ready(out)

    ref = net_reference(x, params)
    assert out.shape == (B, OUTPUT_SIZE)
    # bf16 hidden matmuls with f32 accumulation (output head is fully f32).
    assert jnp.allclose(out, ref, atol=2e-2, rtol=2e-2), "Pallas output mismatch vs reference"

    print("KERNEL_OK")
</pallas_src>

<mosaic_0001>
module attributes {stable_mosaic.version = 11 : i64} {
  func.func @kernel(%arg0: i32, %arg1: memref<16x16xf32, #tpu.memory_space<vmem>>, %arg2: memref<16x128xbf16, #tpu.memory_space<vmem>>, %arg3: memref<1x128xf32, #tpu.memory_space<vmem>>, %arg4: memref<128x128xbf16, #tpu.memory_space<vmem>>, %arg5: memref<1x128xf32, #tpu.memory_space<vmem>>, %arg6: memref<1x128xf32, #tpu.memory_space<vmem>>, %arg7: memref<1x1xf32, #tpu.memory_space<vmem>>, %arg8: memref<16x1xf32, #tpu.memory_space<vmem>>) attributes {dimension_semantics = [#tpu.dimension_semantics<parallel>], iteration_bounds = array<i64: 2>, scalar_prefetch = 0 : i64, scratch_operands = 0 : i64, tpu.core_type = #tpu.core_type<tc>, window_params = [{transform_indices = @transform_0, window_bounds = array<i64: 16, 16>}, {pipeline_mode = #tpu.pipeline_mode<synchronous>, transform_indices = @transform_1, window_bounds = array<i64: 16, 128>}, {pipeline_mode = #tpu.pipeline_mode<synchronous>, transform_indices = @transform_2, window_bounds = array<i64: 1, 128>}, {pipeline_mode = #tpu.pipeline_mode<synchronous>, transform_indices = @transform_3, window_bounds = array<i64: 128, 128>}, {pipeline_mode = #tpu.pipeline_mode<synchronous>, transform_indices = @transform_4, window_bounds = array<i64: 1, 128>}, {pipeline_mode = #tpu.pipeline_mode<synchronous>, transform_indices = @transform_5, window_bounds = array<i64: 1, 128>}, {pipeline_mode = #tpu.pipeline_mode<synchronous>, transform_indices = @transform_6, window_bounds = array<i64: 1, 1>}, {transform_indices = @transform_7, window_bounds = array<i64: 16, 1>}]} {
    %c0 = arith.constant 0 : index
    %c0_0 = arith.constant 0 : index
    %0 = vector.load %arg1[%c0, %c0_0] : memref<16x16xf32, #tpu.memory_space<vmem>>, vector<16x16xf32>
    %1 = arith.truncf %0 : vector<16x16xf32> to vector<16x16xbf16>
    %c0_1 = arith.constant 0 : index
    %c0_2 = arith.constant 0 : index
    %2 = vector.load %arg2[%c0_1, %c0_2] : memref<16x128xbf16, #tpu.memory_space<vmem>>, vector<16x128xbf16>
    %c0_3 = arith.constant 0 : index
    %c0_4 = arith.constant 0 : index
    %3 = vector.load %arg3[%c0_3, %c0_4] : memref<1x128xf32, #tpu.memory_space<vmem>>, vector<1x128xf32>
    %cst = arith.constant dense<0.000000e+00> : vector<16x128xf32>
    %4 = tpu.matmul %1, %2, %cst {dimension_numbers = #tpu.dot_dimension_numbers<[1], [0], [0], [1], [0, 0, 1, 1], [], []>} : vector<16x16xbf16>, vector<16x128xbf16>, vector<16x128xf32> -> vector<16x128xf32>
    %5 = vector.broadcast %3 : vector<1x128xf32> to vector<16x128xf32>
    %6 = arith.addf %4, %5 : vector<16x128xf32>
    %cst_5 = arith.constant 0.000000e+00 : f32
    %7 = vector.broadcast %cst_5 : f32 to vector<16x128xf32>
    %8 = arith.maximumf %6, %7 : vector<16x128xf32>
    %9 = arith.truncf %8 : vector<16x128xf32> to vector<16x128xbf16>
    %c0_6 = arith.constant 0 : index
    %c0_7 = arith.constant 0 : index
    %10 = vector.load %arg4[%c0_6, %c0_7] : memref<128x128xbf16, #tpu.memory_space<vmem>>, vector<128x128xbf16>
    %c0_8 = arith.constant 0 : index
    %c0_9 = arith.constant 0 : index
    %11 = vector.load %arg5[%c0_8, %c0_9] : memref<1x128xf32, #tpu.memory_space<vmem>>, vector<1x128xf32>
    %cst_10 = arith.constant dense<0.000000e+00> : vector<16x128xf32>
    %12 = tpu.matmul %9, %10, %cst_10 {dimension_numbers = #tpu.dot_dimension_numbers<[1], [0], [0], [1], [0, 0, 1, 1], [], []>} : vector<16x128xbf16>, vector<128x128xbf16>, vector<16x128xf32> -> vector<16x128xf32>
    %13 = vector.broadcast %11 : vector<1x128xf32> to vector<16x128xf32>
    %14 = arith.addf %12, %13 : vector<16x128xf32>
    %cst_11 = arith.constant 0.000000e+00 : f32
    %15 = vector.broadcast %cst_11 : f32 to vector<16x128xf32>
    %16 = arith.maximumf %14, %15 : vector<16x128xf32>
    %c0_12 = arith.constant 0 : index
    %c0_13 = arith.constant 0 : index
    %17 = vector.load %arg6[%c0_12, %c0_13] : memref<1x128xf32, #tpu.memory_space<vmem>>, vector<1x128xf32>
    %c0_14 = arith.constant 0 : index
    %c0_15 = arith.constant 0 : index
    %18 = vector.load %arg7[%c0_14, %c0_15] : memref<1x1xf32, #tpu.memory_space<vmem>>, vector<1x1xf32>
    %19 = vector.broadcast %17 : vector<1x128xf32> to vector<16x128xf32>
    %20 = arith.mulf %16, %19 : vector<16x128xf32>
    %cst_16 = arith.constant dense<0.000000e+00> : vector<16xf32>
    %21 = vector.multi_reduction <add>, %20, %cst_16 [1] : vector<16x128xf32> to vector<16xf32>
    %22 = vector.shape_cast %21 : vector<16xf32> to vector<16x1xf32>
    %23 = vector.broadcast %18 : vector<1x1xf32> to vector<16x1xf32>
    %24 = arith.addf %22, %23 : vector<16x1xf32>
    %25 = arith.negf %24 : vector<16x1xf32>
    %26 = math.exp %25 : vector<16x1xf32>
    %cst_17 = arith.constant 1.000000e+00 : f32
    %27 = vector.broadcast %cst_17 : f32 to vector<16x1xf32>
    %28 = arith.addf %27, %26 : vector<16x1xf32>
    %29 = arith.divf %27, %28 : vector<16x1xf32>
    %c0_18 = arith.constant 0 : index
    %c0_19 = arith.constant 0 : index
    %30 = vector.load %arg8[%c0_18, %c0_19] : memref<16x1xf32, #tpu.memory_space<vmem>>, vector<16x1xf32>
    tpu.vector_store %arg8[%c0_18, %c0_19], %29 {strides = array<i32>} : memref<16x1xf32, #tpu.memory_space<vmem>>, vector<16x1xf32>,
    return
  }
  func.func @transform_0(%arg0: i32) -> (i32, i32) {
    %c0_i32 = arith.constant 0 : i32
    %c0_i32_0 = arith.constant 0 : i32
    return %arg0, %c0_i32 : i32, i32
  }
  func.func @transform_1(%arg0: i32) -> (i32, i32) {
    %c0_i32 = arith.constant 0 : i32
    %c0_i32_0 = arith.constant 0 : i32
    %c0_i32_1 = arith.constant 0 : i32
    return %c0_i32, %c0_i32_0 : i32, i32
  }
  func.func @transform_2(%arg0: i32) -> (i32, i32) {
    %c0_i32 = arith.constant 0 : i32
    %c0_i32_0 = arith.constant 0 : i32
    %c0_i32_1 = arith.constant 0 : i32
    return %c0_i32, %c0_i32_0 : i32, i32
  }
  func.func @transform_3(%arg0: i32) -> (i32, i32) {
    %c0_i32 = arith.constant 0 : i32
    %c0_i32_0 = arith.constant 0 : i32
    %c0_i32_1 = arith.constant 0 : i32
    return %c0_i32, %c0_i32_0 : i32, i32
  }
  func.func @transform_4(%arg0: i32) -> (i32, i32) {
    %c0_i32 = arith.constant 0 : i32
    %c0_i32_0 = arith.constant 0 : i32
    %c0_i32_1 = arith.constant 0 : i32
    return %c0_i32, %c0_i32_0 : i32, i32
  }
  func.func @transform_5(%arg0: i32) -> (i32, i32) {
    %c0_i32 = arith.constant 0 : i32
    %c0_i32_0 = arith.constant 0 : i32
    %c0_i32_1 = arith.constant 0 : i32
    return %c0_i32, %c0_i32_0 : i32, i32
  }
  func.func @transform_6(%arg0: i32) -> (i32, i32) {
    %c0_i32 = arith.constant 0 : i32
    %c0_i32_0 = arith.constant 0 : i32
    %c0_i32_1 = arith.constant 0 : i32
    return %c0_i32, %c0_i32_0 : i32, i32
  }
  func.func @transform_7(%arg0: i32) -> (i32, i32) {
    %c0_i32 = arith.constant 0 : i32
    %c0_i32_0 = arith.constant 0 : i32
    return %arg0, %c0_i32 : i32, i32
  }
}

</mosaic_0001>

<bundles_post_ra>
// kernel: tpu_custom_call.1
= control target key start
LH: loop header
LB: loop body
LE: loop exit
PB: predicated region body
PF: predicated region fallthrough
CT: control target
= control target key end

     0   :  { %s770_s0 = inlined_call_operand.vmem [shape: f32[32,16], index: 0, kind: input, shape index: {}]   ;;  %s771_s1 = inlined_call_operand.vmem [shape: bf16[16,128], index: 1, kind: input, shape index: {}]   ;;  %s772_s2 = inlined_call_operand.vmem [shape: f32[1,128], index: 2, kind: input, shape index: {}]   ;;  %s773_s3 = inlined_call_operand.hbm [shape: bf16[128,128], index: 3, kind: input, shape index: {}]   ;;  %s774_s4 = inlined_call_operand.vmem [shape: f32[1,128], index: 4, kind: input, shape index: {}]   ;;  %s775_s5 = inlined_call_operand.vmem [shape: f32[1,128], index: 5, kind: input, shape index: {}]   ;;  %s776_s6 = inlined_call_operand.<no memory space> [shape: f32[1,1], index: 6, kind: input, shape index: {}]   ;;  %s777_s7 = inlined_call_operand.vmem [shape: f32[32,1], index: 7, kind: output, shape index: {}]  }
   0x1   :  { %v12_v0 = vstv %s776_s6 }
   0x2   :  { %13 = vst [vmem:[#allocation2] sm:$0x1] %v12_v0 }
   0x3   :  { %14 = vsyncpa [#allocation4], 0  ;;  %s729_s26 = smov 0  }
   0x4 LB: > { %s220_s29 = sshll.u32 %s773_s3, 4  ;;  %s547_s30 = sadd.s32 4294967295, %s681_s26   ;;  %s681_s26 = sphi %s729_s26, %s20_s26   ;;  %s221_s29 = int_to_ptr.hbm [resolvable:$true] %s220_s29 }
   0x5   : > { %p549_p0 = scmp.ge.s32.totalorder %s681_s26, 1  ;;  %p203_p1 = scmp.lt.s32.totalorder %s681_s26, 3 }
   0x6   : > { %p616_p2 = scmp.eq.s32.totalorder %s547_s30, 0  ;;  %s683_s6 = smov [#allocation3]  }
   0x7   : > { %p204_p3 = pnand %p549_p0, %p203_p1  ;;  %s222_s8 = sshll.u32 %s683_s6, 4  ;;  %s223_s8 = int_to_ptr.vmem [resolvable:$true] %s222_s8 }
   0x8   : > { %s684_s9 = smov 64   ;;  %s685_s10 = smov 4  }
   0x9   : > { %p612_p4 = pneg %p204_p3  ;;  %256 = sbr.rel (%p204_p3) target bundleno = 451 (0x1c3), region = 48 }
   0xb   : > { %p613_p5 = pnand %p616_p2, %p612_p4 }
   0xd   : > { %615 = dma.hbm_to_vmem [thread:$0]  (!%p613_p5), %s221_s29, 1024, %s223_s8, [#allocation4], %s684_s9, %s684_s9, %s685_s10  }
   0xe   : > { %676 = dma.done.wait (%p616_p2), [#allocation4], 1024  }
   0xf   : > { %678 = vsyncadd (%p616_p2), [#allocation4], 4294966272  ;;  %s554_s11 = sshll.u32 %s547_s30, 1  ;;  %v599_v1 = vld [vmem:[%s771_s1] sm:$0xff]  ;;  %vm317_vm0 = vcmask 130048   ;;  %v606_v6 = vld [vmem:[#allocation3 + $0x30] sm:$0xff] }
  0x10   : > { %p290_p6 = scmp.lt.s32.totalorder %s554_s11, 3  ;;  %v607_v5 = vld [vmem:[#allocation3 + $0x38] sm:$0xff]  ;;  %328 = vmatpush.bf16.msra.mxu0 %v599_v1  ;;  %v605_v7 = vld [vmem:[#allocation3 + $0x28] sm:$0xff]  ;;  %v604_v8 = vld [vmem:[#allocation3 + $0x20] sm:$0xff]  ;;  %vm476_vm3 = vcmask 7168  }
  0x11   : > { %406 = vmatpush.bf16.msra.mxu1 %v607_v5  ;;  %v603_v9 = vld [vmem:[#allocation3 + $0x18] sm:$0xff]  ;;  %v602_v10 = vld [vmem:[#allocation3 + $0x10] sm:$0xff]  ;;  %v601_v11 = vld [vmem:[#allocation3 + $0x8] sm:$0xff] }
  0x12   : > { %s779_s11 = smov (!%p290_p6, %s554_s11), 3  ;;  %v600_v12 = vld [vmem:[#allocation3] sm:$0xff]  ;;  %v629_v14 = vld [vmem:[%s772_s2] ss:$0 sm:$0xff] }
  0x13   : > { %s555_s12 = sshll.u32 %s779_s11, 3  ;;  %v630_v21 = vld [vmem:[%s774_s4] ss:$0 sm:$0xff] }
  0x14   : > { %s293_s15 = scalar_lea.vmem %s770_s0, %s555_s12  ;;  %v631_v24 = vld [vmem:[%s775_s5] ss:$0 sm:$0xff]  ;;  %s299_s27 = scalar_lea.vmem %s777_s7, %s555_s12 }
  0x15   : > { %v302_v2 = vld [vmem:[%s293_s15] sm:$0xff]  ;;  %v303_v3 = vld [vmem:[%s293_s15 + $0x8] sm:$0xff]  ;;  %407 = vmatpush.bf16.msra.mxu1 %v606_v6 }
  0x16   : > { %v304_v4 = vpack.c.bf16 %v303_v3, %v302_v2  ;;  %v632_v31 = vld [vmem:[#allocation2] ss:$0 sm:$0xff] }
  0x18   : > { %562 = vmatmul.msk.bf16.vlgmr.msra.gmra.mxu0 %vm317_vm0, %v304_v4 }
  0x19   : > { %408 = vmatpush.bf16.msra.mxu1 %v605_v7 }
  0x1d   : > { %409 = vmatpush.bf16.msra.mxu1 %v604_v8 }
  0x21   : > { %410 = vmatpush.bf16.msra.mxu1 %v603_v9 }
  0x25   : > { %411 = vmatpush.bf16.msra.mxu1 %v602_v10 }
  0x29   : > { %412 = vmatpush.bf16.msra.mxu1 %v601_v11 }
  0x2d   : > { %413 = vmatpush.bf16.msra.mxu1 %v600_v12 }
  0x95   : > { %v330_v13 = vpop.f32.mrf.mxu0 }
  0x96   : > { %v331_v15 = vadd.f32 %v629_v14, %v330_v13 }
  0x98   : > { %v335_v18 = vmax.f32 %v331_v15, 0.0 }
  0x9d   : > { %v332_v16 = vpop.f32.mrf.mxu0 }
  0x9e   : > { %v333_v17 = vadd.f32 %v629_v14, %v332_v16 }
  0xa0   : > { %v336_v19 = vmax.f32 %v333_v17, 0.0 }
  0xa2   : > { %v337_v20 = vpack.c.bf16 %v336_v19, %v335_v18 }
  0xa4   : > { %414 = vmatmul.bf16.vlgmr.msra.gmra.mxu1 %v337_v20 }
 0x121   : > { %v415_v22 = vpop.f32.mrf.mxu1 }
 0x122   : > { %v416_v23 = vadd.f32 %v630_v21, %v415_v22 }
 0x124   : > { %v420_v25 = vmax.f32 %v416_v23, 0.0 }
 0x126   : > { %v427_v26 = vmul.f32 %v631_v24, %v420_v25 }
 0x128   : > { %429 = vadd.xlane.f32.xlu0 %v427_v26 }
 0x129   : > { %v417_v27 = vpop.f32.mrf.mxu1 }
 0x12a   : > { %v418_v28 = vadd.f32 %v630_v21, %v417_v27 }
 0x12c   : > { %v421_v29 = vmax.f32 %v418_v28, 0.0 }
 0x12e   : > { %v428_v30 = vmul.f32 %v631_v24, %v421_v29 }
 0x130   : > { %431 = vadd.xlane.f32.xlu0 %v428_v30 }
 0x19b   : > { %v430_v32 = vpop.xlane.xlu0 %429 }
 0x19c   : > { %v436_v33 = vadd.f32 %v632_v31, %v430_v32 }
 0x19e   : > { %v595_v34 = vmul.f32 -1.442695, %v436_v33 }
 0x1a0   : > { %633 = vpow2.f32 %v595_v34 }
 0x1a3   : > { %v432_v35 = vpop.xlane.xlu0 %431 }
 0x1a4   : > { %v437_v36 = vadd.f32 %v632_v31, %v432_v35 }
 0x1a6   : > { %v634_v37 = vpop.eup %633  ;;  %v596_v38 = vmul.f32 -1.442695, %v437_v36 }
 0x1a7   : > { %v444_v39 = vadd.f32 1.0, %v634_v37 }
 0x1a8   : > { %635 = vpow2.f32 %v596_v38 }
 0x1a9   : > { %637 = vrcp.f32 %v444_v39  ;;  %v457_v45 = vand.u32 2147483648, %v444_v39  ;;  %v455_v47 = vand.u32 2147483647, %v444_v39  ;;  %vm451_vm2 = vweird.f32 %v444_v39 }
 0x1ab   : > { %v458_v50 = vor.u32 1.1754944e-38, %v457_v45  ;;  %vm456_vm5 = vcmp.eq.f32.partialorder %v455_v47, 8.507059e+37 }
 0x1ae   : > { %v636_v40 = vpop.eup %635 }
 0x1af   : > { %v638_v41 = vpop.eup %637  ;;  %v445_v42 = vadd.f32 1.0, %v636_v40 }
 0x1b0   : > { %v447_v43 = vmul.f32 %v638_v41, %v444_v39  ;;  %vm452_vm1 = vweird.f32 %v638_v41 }
 0x1b1   : > { %639 = vrcp.f32 %v445_v42  ;;  %vm453_vm4 = vmor %vm451_vm2, %vm452_vm1  ;;  %v472_v55 = vand.u32 2147483648, %v445_v42  ;;  %v470_v57 = vand.u32 2147483647, %v445_v42  ;;  %vm466_vm7 = vweird.f32 %v445_v42 }
 0x1b2   : > { %v448_v44 = vsub.f32 1.0, %v447_v43 }
 0x1b3   : > { %v473_v59 = vor.u32 1.1754944e-38, %v472_v55  ;;  %vm471_vm9 = vcmp.eq.f32.partialorder %v470_v57, 8.507059e+37 }
 0x1b4   : > { %v449_v46 = vmul.f32 %v638_v41, %v448_v44 }
 0x1b6   : > { %v450_v48 = vadd.f32 %v638_v41, %v449_v46 }
 0x1b7   : > { %v640_v49 = vpop.eup %639 }
 0x1b8   : > { %v454_v51 = vsel %vm453_vm4, %v638_v41, %v450_v48  ;;  %v462_v52 = vmul.f32 %v640_v49, %v445_v42  ;;  %vm467_vm6 = vweird.f32 %v640_v49 }
 0x1b9   : > { %v459_v53 = vsel %vm456_vm5, %v458_v50, %v454_v51  ;;  %vm468_vm8 = vmor %vm466_vm7, %vm467_vm6 }
 0x1ba   : > { %477 = vst.msk [vmem:[%s299_s27] sm:$0xff] %vm476_vm3, %v459_v53  ;;  %v463_v54 = vsub.f32 1.0, %v462_v52 }
 0x1bc   : > { %v464_v56 = vmul.f32 %v640_v49, %v463_v54 }
 0x1be   : > { %v465_v58 = vadd.f32 %v640_v49, %v464_v56 }
 0x1c0   : > { %v469_v60 = vsel %vm468_vm8, %v640_v49, %v465_v58 }
 0x1c1   : > { %v474_v61 = vsel %vm471_vm9, %v473_v59, %v469_v60 }
 0x1c2   : > { %478 = vst.msk [vmem:[%s299_s27 + $0x8] sm:$0xff] %vm476_vm3, %v474_v61 }
 0x1c3 PF: > { %s20_s26 = sadd.s32 1, %s681_s26  }
 0x1c4   : > { %p17_p7 = scmp.ge.s32.totalorder %s20_s26, 4  }
 0x1c6   :  { %19 = sbr.rel (!%p17_p7) target bundleno = 4 (0x4), region = 83 }
 0x1cb   :  { %501 = vsyncpa [#allocation4], 1 }
 0x1cc   :  { %503 = vsyncpa [#allocation4 + $0x1], 1 }

</bundles_post_ra>
